<compile_context>
chip_gen: v6e
topology: v6e:2x2x1
jax: 0.10.0
libtpu: 0.0.40
codegen_flags: <defaults>
</compile_context>

<pallas_src>
import jax
import jax.numpy as jnp
from jax import lax
from jax.experimental import pallas as pl
from jax.experimental.pallas import tpu as pltpu


_ACC_WIDTH = 512                 # accumulator lane width (4 f32 vregs)
_MAX_CHUNKS_PER_BLOCK = 64       # caps static unroll of the in-tile fold loop
_TARGET_TILE_BYTES = 8 << 20     # per-step input block (Pallas double-buffers it)
_VMEM_LIMIT_BYTES = 32 << 20     # safe on v5e/v6e (128 MiB) and v7x (64 MiB)


def _largest_divisor_at_most(n, cap):
    cap = max(1, min(n, cap))
    for d in range(cap, 0, -1):
        if n % d == 0:
            return d
    return 1


def _make_channel_attention_kernel(hw_total, hw_block, acc_width, n_hw):
    n_chunks = hw_block // acc_width
    assert n_chunks * acc_width == hw_block
    # Valid lanes inside the final HW block (== hw_block when HW % hw_block == 0).
    valid_last = hw_total - (n_hw - 1) * hw_block
    inv_hw = 1.0 / float(hw_total)

    def kernel(x_ref, w1t_ref, w2t_ref, o_ref, max_sc, sum_sc):
        hw_id = pl.program_id(1)
        last = n_hw - 1

        @pl.when(hw_id == 0)
        def _init():
            max_sc[...] = jnp.full_like(max_sc, -jnp.inf)
            sum_sc[...] = jnp.zeros_like(sum_sc)

        def accumulate(valid_width):
            # Fold the (Bblk, C, hw_block) tile into the fixed-width
            # (Bblk, C, acc_width) f32 accumulators, one static 512-lane chunk
            # at a time (VALU max/add only; one f32 cast reused by max & sum).
            for c in range(n_chunks):
                start = c * acc_width
                if start >= valid_width:
                    break                      # chunk entirely out of range: skip
                chunk = x_ref[:, :, start:start + acc_width].astype(jnp.float32)
                n_valid = valid_width - start
                if n_valid < acc_width:        # static: only the straddling chunk
                    lane = lax.broadcasted_iota(jnp.int32, chunk.shape, dimension=2)
                    valid = lane < n_valid
                    cmax = jnp.where(valid, chunk, -jnp.inf)
                    csum = jnp.where(valid, chunk, 0.0)
                else:
                    cmax = chunk
                    csum = chunk
                max_sc[...] = jnp.maximum(max_sc[...], cmax)
                sum_sc[...] = sum_sc[...] + csum

        if n_hw > 1:
            # Hot loop: interior HW steps are fully unmasked.
            @pl.when(hw_id < last)
            def _interior():
                accumulate(hw_block)

        @pl.when(hw_id == last)
        def _last_step():
            # Tail (possibly masked) accumulate, then reduce + SE + sigmoid.
            accumulate(valid_last)

            # Single cross-lane reduce over the fixed-width partials.
            max_pool = jnp.max(max_sc[...], axis=-1)              # (Bblk, C) f32
            avg_pool = jnp.sum(sum_sc[...], axis=-1) * inv_hw     # (Bblk, C) f32

            # Fused SE branches: one matmul pair over the stacked pools.
            pooled = jnp.concatenate([max_pool, avg_pool], axis=0)  # (2*Bblk, C)
            w1t = w1t_ref[...]                                      # (C, Cmid)
            w2t = w2t_ref[...]                                      # (Cmid, C)
            h = jnp.dot(pooled.astype(w1t.dtype), w1t,
                        preferred_element_type=jnp.float32)
            h = jnp.maximum(h, 0.0)                                 # ReLU
            y = jnp.dot(h.astype(w2t.dtype), w2t,
                        preferred_element_type=jnp.float32)         # (2*Bblk, C)

            bblk = max_pool.shape[0]
            out = jax.nn.sigmoid(y[:bblk] + y[bblk:])               # (Bblk, C)
            # NOTE: out_spec's block index is constant along the HW axis, so
            # this deferred write is flushed only after the final HW step.
            # Do not change that index_map without revisiting this.
            o_ref[...] = out.reshape(o_ref.shape).astype(o_ref.dtype)

    return kernel


def channel_attention(x, w1, w2):
    """x: (B, C, H, W); w1: (Cmid, C); w2: (C, Cmid). Returns (B, C, 1, 1)."""
    B, C, H, W = x.shape
    HW = H * W
    Cmid = w1.shape[0]
    itemsize = jnp.dtype(x.dtype).itemsize

    x_flat = x.reshape(B, C, HW)
    # Pre-transpose weights once in the wrapper: no in-kernel .T, no upcast.
    w1t = jnp.transpose(w1)          # (C, Cmid)
    w2t = jnp.transpose(w2)          # (Cmid, C)

    # ---- HW tile: grow (in 512-lane chunks) toward the byte budget --------
    if HW <= _ACC_WIDTH:
        acc_width = HW
        hw_block = HW
    else:
        acc_width = _ACC_WIDTH
        budget_chunks = max(1, _TARGET_TILE_BYTES // (C * acc_width * itemsize))
        n_chunks = min(budget_chunks, HW // acc_width, _MAX_CHUNKS_PER_BLOCK)
        hw_block = n_chunks * acc_width
    n_hw = pl.cdiv(HW, hw_block)

    # ---- Batch rows per block: spend leftover budget, but keep the batch
    # grid extent >= 2 where possible so v7x megacore can shard it. ---------
    row_block_bytes = C * hw_block * itemsize
    max_rows = max(1, _TARGET_TILE_BYTES // row_block_bytes)
    cap = min(max_rows, B // 2) if B >= 2 else 1
    b_blk = _largest_divisor_at_most(B, cap)
    # TODO(synk): if B == 1 on v7x, one TensorCore idles during pooling;
    # splitting the HW range across cores with per-core partials would fix it.

    kernel = _make_channel_attention_kernel(HW, hw_block, acc_width, n_hw)

    # Advisory cost estimate with per-array byte counts.
    cost = pl.CostEstimate(
        flops=2 * B * C * HW + 2 * B * (2 * C * Cmid + 2 * Cmid * C),
        transcendentals=B * C,                                # sigmoid
        bytes_accessed=(x_flat.size * itemsize
                        + w1.size * jnp.dtype(w1.dtype).itemsize
                        + w2.size * jnp.dtype(w2.dtype).itemsize
                        + B * C * itemsize),
    )

    def build(buffered_weights):
        wkw = {"pipeline_mode": pl.Buffered(1)} if buffered_weights else {}
        grid_spec = pltpu.PrefetchScalarGridSpec(
            num_scalar_prefetch=0,
            grid=(B // b_blk, n_hw),
            in_specs=[
                pl.BlockSpec((b_blk, C, hw_block), lambda b, h: (b, 0, h)),
                pl.BlockSpec((C, Cmid), lambda b, h: (0, 0), **wkw),
                pl.BlockSpec((Cmid, C), lambda b, h: (0, 0), **wkw),
            ],
            out_specs=pl.BlockSpec((b_blk, 1, C), lambda b, h: (b, 0, 0)),
            scratch_shapes=[
                pltpu.VMEM((b_blk, C, acc_width), jnp.float32),  # running max (f32)
                pltpu.VMEM((b_blk, C, acc_width), jnp.float32),  # running sum (f32)
            ],
        )
        return pl.pallas_call(
            kernel,
            out_shape=jax.ShapeDtypeStruct((B, 1, C), x.dtype),
            grid_spec=grid_spec,
            compiler_params=pltpu.CompilerParams(
                dimension_semantics=("parallel", "arbitrary"),
                vmem_limit_bytes=_VMEM_LIMIT_BYTES,
            ),
            cost_estimate=cost,
        )(x_flat, w1t, w2t)

    try:
        out = build(buffered_weights=True)
    except Exception:
        # pl.Buffered(1) not supported on this jax version -> default buffering.
        out = build(buffered_weights=False)

    return out.reshape(B, C, 1, 1)


def reference_channel_attention(x, w1, w2):
    # Pure-JAX reference mirroring the PyTorch forward.
    max_pool = jnp.max(x, axis=(2, 3))
    avg_pool = jnp.mean(x, axis=(2, 3))

    def se(p):
        h = jnp.maximum(p @ w1.T, 0.0)
        return h @ w2.T

    return jax.nn.sigmoid(se(max_pool) + se(avg_pool))[:, :, None, None]


if __name__ == "__main__":
    # Module defaults: channel=16, reduction=2 -> Cmid = 8.
    B, C, reduction = 2, 16, 2
    Cmid = C // reduction

    key = jax.random.PRNGKey(0)
    kx, kw1, kw2, kx2 = jax.random.split(key, 4)

    w1 = jax.random.normal(kw1, (Cmid, C), dtype=jnp.float32) * (1.0 / jnp.sqrt(C))
    w2 = jax.random.normal(kw2, (C, Cmid), dtype=jnp.float32) * (1.0 / jnp.sqrt(Cmid))

    # Case 1: module-default small shape (single HW step, single chunk).
    x = jax.random.normal(kx, (B, C, 16, 16), dtype=jnp.float32)
    out = jax.block_until_ready(channel_attention(x, w1, w2))
    ref = reference_channel_attention(x, w1, w2)
    assert out.shape == (B, C, 1, 1), out.shape
    assert jnp.allclose(out, ref, atol=1e-5, rtol=1e-5), "mismatch (single-tile case)"

    # Case 2: HW > acc_width and not a multiple of it — exercises the tiled
    # grid, the unmasked hot path, the static last-step tail mask and the
    # fixed-width accumulator fold.
    x2 = jax.random.normal(kx2, (B, C, 40, 40), dtype=jnp.float32)
    out2 = jax.block_until_ready(channel_attention(x2, w1, w2))
    ref2 = reference_channel_attention(x2, w1, w2)
    assert jnp.allclose(out2, ref2, atol=1e-5, rtol=1e-5), "mismatch (tiled/masked case)"

    print("KERNEL_OK")
</pallas_src>

<mosaic_0001>
module attributes {stable_mosaic.version = 11 : i64} {
  func.func @kernel(%arg0: i32, %arg1: i32, %arg2: memref<1x16x256xf32, #tpu.memory_space<vmem>>, %arg3: memref<16x8xf32, #tpu.memory_space<vmem>>, %arg4: memref<8x16xf32, #tpu.memory_space<vmem>>, %arg5: memref<1x1x16xf32, #tpu.memory_space<vmem>>, %arg6: memref<1x16x256xf32, #tpu.memory_space<vmem>>, %arg7: memref<1x16x256xf32, #tpu.memory_space<vmem>>) attributes {dimension_semantics = [#tpu.dimension_semantics<parallel>, #tpu.dimension_semantics<arbitrary>], iteration_bounds = array<i64: 2, 1>, scalar_prefetch = 0 : i64, scratch_operands = 2 : i64, tpu.core_type = #tpu.core_type<tc>, window_params = [{transform_indices = @transform_0, window_bounds = array<i64: 1, 16, 256>}, {pipeline_mode = #tpu.pipeline_mode<synchronous>, transform_indices = @transform_1, window_bounds = array<i64: 16, 8>}, {pipeline_mode = #tpu.pipeline_mode<synchronous>, transform_indices = @transform_2, window_bounds = array<i64: 8, 16>}, {transform_indices = @transform_3, window_bounds = array<i64: 1, 1, 16>}]} {
    %c0_i32 = arith.constant 0 : i32
    %0 = arith.cmpi eq, %arg1, %c0_i32 : i32
    %1 = arith.extui %0 : i1 to i32
    %c0_i32_0 = arith.constant 0 : i32
    %2 = arith.cmpi ne, %1, %c0_i32_0 : i32
    scf.if %2 {
      %cst = arith.constant 0xFF800000 : f32
      %6 = vector.broadcast %cst : f32 to vector<1x16x256xf32>
      %c0 = arith.constant 0 : index
      %c0_3 = arith.constant 0 : index
      %c0_4 = arith.constant 0 : index
      %7 = vector.load %arg6[%c0, %c0_3, %c0_4] : memref<1x16x256xf32, #tpu.memory_space<vmem>>, vector<1x16x256xf32>
      tpu.vector_store %arg6[%c0, %c0_3, %c0_4], %6 {strides = array<i32>} : memref<1x16x256xf32, #tpu.memory_space<vmem>>, vector<1x16x256xf32>,
      %cst_5 = arith.constant 0.000000e+00 : f32
      %8 = vector.broadcast %cst_5 : f32 to vector<1x16x256xf32>
      %c0_6 = arith.constant 0 : index
      %c0_7 = arith.constant 0 : index
      %c0_8 = arith.constant 0 : index
      %9 = vector.load %arg7[%c0_6, %c0_7, %c0_8] : memref<1x16x256xf32, #tpu.memory_space<vmem>>, vector<1x16x256xf32>
      tpu.vector_store %arg7[%c0_6, %c0_7, %c0_8], %8 {strides = array<i32>} : memref<1x16x256xf32, #tpu.memory_space<vmem>>, vector<1x16x256xf32>,
    } else {
    }
    %c0_i32_1 = arith.constant 0 : i32
    %3 = arith.cmpi eq, %arg1, %c0_i32_1 : i32
    %4 = arith.extui %3 : i1 to i32
    %c0_i32_2 = arith.constant 0 : i32
    %5 = arith.cmpi ne, %4, %c0_i32_2 : i32
    scf.if %5 {
      %c0 = arith.constant 0 : index
      %c0_3 = arith.constant 0 : index
      %c0_4 = arith.constant 0 : index
      %6 = vector.load %arg2[%c0, %c0_3, %c0_4] : memref<1x16x256xf32, #tpu.memory_space<vmem>>, vector<1x16x256xf32>
      %c0_5 = arith.constant 0 : index
      %c0_6 = arith.constant 0 : index
      %c0_7 = arith.constant 0 : index
      %7 = vector.load %arg6[%c0_5, %c0_6, %c0_7] : memref<1x16x256xf32, #tpu.memory_space<vmem>>, vector<1x16x256xf32>
      %8 = arith.maximumf %7, %6 : vector<1x16x256xf32>
      %c0_8 = arith.constant 0 : index
      %c0_9 = arith.constant 0 : index
      %c0_10 = arith.constant 0 : index
      %9 = vector.load %arg6[%c0_8, %c0_9, %c0_10] : memref<1x16x256xf32, #tpu.memory_space<vmem>>, vector<1x16x256xf32>
      tpu.vector_store %arg6[%c0_8, %c0_9, %c0_10], %8 {strides = array<i32>} : memref<1x16x256xf32, #tpu.memory_space<vmem>>, vector<1x16x256xf32>,
      %c0_11 = arith.constant 0 : index
      %c0_12 = arith.constant 0 : index
      %c0_13 = arith.constant 0 : index
      %10 = vector.load %arg7[%c0_11, %c0_12, %c0_13] : memref<1x16x256xf32, #tpu.memory_space<vmem>>, vector<1x16x256xf32>
      %11 = arith.addf %10, %6 : vector<1x16x256xf32>
      %c0_14 = arith.constant 0 : index
      %c0_15 = arith.constant 0 : index
      %c0_16 = arith.constant 0 : index
      %12 = vector.load %arg7[%c0_14, %c0_15, %c0_16] : memref<1x16x256xf32, #tpu.memory_space<vmem>>, vector<1x16x256xf32>
      tpu.vector_store %arg7[%c0_14, %c0_15, %c0_16], %11 {strides = array<i32>} : memref<1x16x256xf32, #tpu.memory_space<vmem>>, vector<1x16x256xf32>,
      %c0_17 = arith.constant 0 : index
      %c0_18 = arith.constant 0 : index
      %c0_19 = arith.constant 0 : index
      %13 = vector.load %arg6[%c0_17, %c0_18, %c0_19] : memref<1x16x256xf32, #tpu.memory_space<vmem>>, vector<1x16x256xf32>
      %cst = arith.constant dense<0xFF800000> : vector<1x16xf32>
      %14 = vector.multi_reduction <maximumf>, %13, %cst [2] : vector<1x16x256xf32> to vector<1x16xf32>
      %c0_20 = arith.constant 0 : index
      %c0_21 = arith.constant 0 : index
      %c0_22 = arith.constant 0 : index
      %15 = vector.load %arg7[%c0_20, %c0_21, %c0_22] : memref<1x16x256xf32, #tpu.memory_space<vmem>>, vector<1x16x256xf32>
      %cst_23 = arith.constant dense<0.000000e+00> : vector<1x16xf32>
      %16 = vector.multi_reduction <add>, %15, %cst_23 [2] : vector<1x16x256xf32> to vector<1x16xf32>
      %cst_24 = arith.constant 3.906250e-03 : f32
      %17 = vector.broadcast %cst_24 : f32 to vector<1x16xf32>
      %18 = arith.mulf %16, %17 : vector<1x16xf32>
      %19 = tpu.concatenate %14, %18 in 0 : vector<1x16xf32>, vector<1x16xf32> -> vector<2x16xf32>
      %c0_25 = arith.constant 0 : index
      %c0_26 = arith.constant 0 : index
      %20 = vector.load %arg3[%c0_25, %c0_26] : memref<16x8xf32, #tpu.memory_space<vmem>>, vector<16x8xf32>
      %c0_27 = arith.constant 0 : index
      %c0_28 = arith.constant 0 : index
      %21 = vector.load %arg4[%c0_27, %c0_28] : memref<8x16xf32, #tpu.memory_space<vmem>>, vector<8x16xf32>
      %cst_29 = arith.constant dense<0.000000e+00> : vector<2x8xf32>
      %22 = tpu.matmul %19, %20, %cst_29 {dimension_numbers = #tpu.dot_dimension_numbers<[1], [0], [0], [1], [0, 0, 1, 1], [], []>} : vector<2x16xf32>, vector<16x8xf32>, vector<2x8xf32> -> vector<2x8xf32>
      %cst_30 = arith.constant 0.000000e+00 : f32
      %23 = vector.broadcast %cst_30 : f32 to vector<2x8xf32>
      %24 = arith.maximumf %22, %23 : vector<2x8xf32>
      %cst_31 = arith.constant dense<0.000000e+00> : vector<2x16xf32>
      %25 = tpu.matmul %24, %21, %cst_31 {dimension_numbers = #tpu.dot_dimension_numbers<[1], [0], [0], [1], [0, 0, 1, 1], [], []>} : vector<2x8xf32>, vector<8x16xf32>, vector<2x16xf32> -> vector<2x16xf32>
      %26 = vector.extract_strided_slice %25 {offsets = [0, 0], sizes = [1, 16], strides = [1, 1]} : vector<2x16xf32> to vector<1x16xf32>
      %27 = vector.extract_strided_slice %25 {offsets = [1, 0], sizes = [1, 16], strides = [1, 1]} : vector<2x16xf32> to vector<1x16xf32>
      %28 = arith.addf %26, %27 : vector<1x16xf32>
      %29 = arith.negf %28 : vector<1x16xf32>
      %30 = math.exp %29 : vector<1x16xf32>
      %cst_32 = arith.constant 1.000000e+00 : f32
      %31 = vector.broadcast %cst_32 : f32 to vector<1x16xf32>
      %32 = arith.addf %31, %30 : vector<1x16xf32>
      %33 = arith.divf %31, %32 : vector<1x16xf32>
      %34 = vector.shape_cast %33 : vector<1x16xf32> to vector<1x1x16xf32>
      %c0_33 = arith.constant 0 : index
      %c0_34 = arith.constant 0 : index
      %c0_35 = arith.constant 0 : index
      %35 = vector.load %arg5[%c0_33, %c0_34, %c0_35] : memref<1x1x16xf32, #tpu.memory_space<vmem>>, vector<1x1x16xf32>
      tpu.vector_store %arg5[%c0_33, %c0_34, %c0_35], %34 {strides = array<i32>} : memref<1x1x16xf32, #tpu.memory_space<vmem>>, vector<1x1x16xf32>,
    } else {
    }
    return
  }
  func.func @transform_0(%arg0: i32, %arg1: i32) -> (i32, i32, i32) {
    %c0_i32 = arith.constant 0 : i32
    %c0_i32_0 = arith.constant 0 : i32
    return %arg0, %c0_i32, %arg1 : i32, i32, i32
  }
  func.func @transform_1(%arg0: i32, %arg1: i32) -> (i32, i32) {
    %c0_i32 = arith.constant 0 : i32
    %c0_i32_0 = arith.constant 0 : i32
    %c0_i32_1 = arith.constant 0 : i32
    return %c0_i32, %c0_i32_0 : i32, i32
  }
  func.func @transform_2(%arg0: i32, %arg1: i32) -> (i32, i32) {
    %c0_i32 = arith.constant 0 : i32
    %c0_i32_0 = arith.constant 0 : i32
    %c0_i32_1 = arith.constant 0 : i32
    return %c0_i32, %c0_i32_0 : i32, i32
  }
  func.func @transform_3(%arg0: i32, %arg1: i32) -> (i32, i32, i32) {
    %c0_i32 = arith.constant 0 : i32
    %c0_i32_0 = arith.constant 0 : i32
    %c0_i32_1 = arith.constant 0 : i32
    return %arg0, %c0_i32, %c0_i32_0 : i32, i32, i32
  }
}

module attributes {stable_mosaic.version = 11 : i64} {
  func.func @kernel(%arg0: i32, %arg1: i32, %arg2: memref<1x16x256xf32, #tpu.memory_space<vmem>>, %arg3: memref<16x8xf32, #tpu.memory_space<vmem>>, %arg4: memref<8x16xf32, #tpu.memory_space<vmem>>, %arg5: memref<1x1x16xf32, #tpu.memory_space<vmem>>, %arg6: memref<1x16x256xf32, #tpu.memory_space<vmem>>, %arg7: memref<1x16x256xf32, #tpu.memory_space<vmem>>) attributes {dimension_semantics = [#tpu.dimension_semantics<parallel>, #tpu.dimension_semantics<arbitrary>], iteration_bounds = array<i64: 2, 1>, scalar_prefetch = 0 : i64, scratch_operands = 2 : i64, tpu.core_type = #tpu.core_type<tc>, window_params = [{transform_indices = @transform_0, window_bounds = array<i64: 1, 16, 256>}, {pipeline_mode = #tpu.pipeline_mode<synchronous>, transform_indices = @transform_1, window_bounds = array<i64: 16, 8>}, {pipeline_mode = #tpu.pipeline_mode<synchronous>, transform_indices = @transform_2, window_bounds = array<i64: 8, 16>}, {transform_indices = @transform_3, window_bounds = array<i64: 1, 1, 16>}]} {
    %c0_i32 = arith.constant 0 : i32
    %0 = arith.cmpi eq, %arg1, %c0_i32 : i32
    %1 = arith.extui %0 : i1 to i32
    %c0_i32_0 = arith.constant 0 : i32
    %2 = arith.cmpi ne, %1, %c0_i32_0 : i32
    scf.if %2 {
      %cst = arith.constant 0xFF800000 : f32
      %6 = vector.broadcast %cst : f32 to vector<1x16x256xf32>
      %c0 = arith.constant 0 : index
      %c0_3 = arith.constant 0 : index
      %c0_4 = arith.constant 0 : index
      %7 = vector.load %arg6[%c0, %c0_3, %c0_4] : memref<1x16x256xf32, #tpu.memory_space<vmem>>, vector<1x16x256xf32>
      tpu.vector_store %arg6[%c0, %c0_3, %c0_4], %6 {strides = array<i32>} : memref<1x16x256xf32, #tpu.memory_space<vmem>>, vector<1x16x256xf32>,
      %cst_5 = arith.constant 0.000000e+00 : f32
      %8 = vector.broadcast %cst_5 : f32 to vector<1x16x256xf32>
      %c0_6 = arith.constant 0 : index
      %c0_7 = arith.constant 0 : index
      %c0_8 = arith.constant 0 : index
      %9 = vector.load %arg7[%c0_6, %c0_7, %c0_8] : memref<1x16x256xf32, #tpu.memory_space<vmem>>, vector<1x16x256xf32>
      tpu.vector_store %arg7[%c0_6, %c0_7, %c0_8], %8 {strides = array<i32>} : memref<1x16x256xf32, #tpu.memory_space<vmem>>, vector<1x16x256xf32>,
    } else {
    }
    %c0_i32_1 = arith.constant 0 : i32
    %3 = arith.cmpi eq, %arg1, %c0_i32_1 : i32
    %4 = arith.extui %3 : i1 to i32
    %c0_i32_2 = arith.constant 0 : i32
    %5 = arith.cmpi ne, %4, %c0_i32_2 : i32
    scf.if %5 {
      %c0 = arith.constant 0 : index
      %c0_3 = arith.constant 0 : index
      %c0_4 = arith.constant 0 : index
      %6 = vector.load %arg2[%c0, %c0_3, %c0_4] : memref<1x16x256xf32, #tpu.memory_space<vmem>>, vector<1x16x256xf32>
      %c0_5 = arith.constant 0 : index
      %c0_6 = arith.constant 0 : index
      %c0_7 = arith.constant 0 : index
      %7 = vector.load %arg6[%c0_5, %c0_6, %c0_7] : memref<1x16x256xf32, #tpu.memory_space<vmem>>, vector<1x16x256xf32>
      %8 = arith.maximumf %7, %6 : vector<1x16x256xf32>
      %c0_8 = arith.constant 0 : index
      %c0_9 = arith.constant 0 : index
      %c0_10 = arith.constant 0 : index
      %9 = vector.load %arg6[%c0_8, %c0_9, %c0_10] : memref<1x16x256xf32, #tpu.memory_space<vmem>>, vector<1x16x256xf32>
      tpu.vector_store %arg6[%c0_8, %c0_9, %c0_10], %8 {strides = array<i32>} : memref<1x16x256xf32, #tpu.memory_space<vmem>>, vector<1x16x256xf32>,
      %c0_11 = arith.constant 0 : index
      %c0_12 = arith.constant 0 : index
      %c0_13 = arith.constant 0 : index
      %10 = vector.load %arg7[%c0_11, %c0_12, %c0_13] : memref<1x16x256xf32, #tpu.memory_space<vmem>>, vector<1x16x256xf32>
      %11 = arith.addf %10, %6 : vector<1x16x256xf32>
      %c0_14 = arith.constant 0 : index
      %c0_15 = arith.constant 0 : index
      %c0_16 = arith.constant 0 : index
      %12 = vector.load %arg7[%c0_14, %c0_15, %c0_16] : memref<1x16x256xf32, #tpu.memory_space<vmem>>, vector<1x16x256xf32>
      tpu.vector_store %arg7[%c0_14, %c0_15, %c0_16], %11 {strides = array<i32>} : memref<1x16x256xf32, #tpu.memory_space<vmem>>, vector<1x16x256xf32>,
      %c0_17 = arith.constant 0 : index
      %c0_18 = arith.constant 0 : index
      %c0_19 = arith.constant 0 : index
      %13 = vector.load %arg6[%c0_17, %c0_18, %c0_19] : memref<1x16x256xf32, #tpu.memory_space<vmem>>, vector<1x16x256xf32>
      %cst = arith.constant dense<0xFF800000> : vector<1x16xf32>
      %14 = vector.multi_reduction <maximumf>, %13, %cst [2] : vector<1x16x256xf32> to vector<1x16xf32>
      %c0_20 = arith.constant 0 : index
      %c0_21 = arith.constant 0 : index
      %c0_22 = arith.constant 0 : index
      %15 = vector.load %arg7[%c0_20, %c0_21, %c0_22] : memref<1x16x256xf32, #tpu.memory_space<vmem>>, vector<1x16x256xf32>
      %cst_23 = arith.constant dense<0.000000e+00> : vector<1x16xf32>
      %16 = vector.multi_reduction <add>, %15, %cst_23 [2] : vector<1x16x256xf32> to vector<1x16xf32>
      %cst_24 = arith.constant 3.906250e-03 : f32
      %17 = vector.broadcast %cst_24 : f32 to vector<1x16xf32>
      %18 = arith.mulf %16, %17 : vector<1x16xf32>
      %19 = tpu.concatenate %14, %18 in 0 : vector<1x16xf32>, vector<1x16xf32> -> vector<2x16xf32>
      %c0_25 = arith.constant 0 : index
      %c0_26 = arith.constant 0 : index
      %20 = vector.load %arg3[%c0_25, %c0_26] : memref<16x8xf32, #tpu.memory_space<vmem>>, vector<16x8xf32>
      %c0_27 = arith.constant 0 : index
      %c0_28 = arith.constant 0 : index
      %21 = vector.load %arg4[%c0_27, %c0_28] : memref<8x16xf32, #tpu.memory_space<vmem>>, vector<8x16xf32>
      %cst_29 = arith.constant dense<0.000000e+00> : vector<2x8xf32>
      %22 = tpu.matmul %19, %20, %cst_29 {dimension_numbers = #tpu.dot_dimension_numbers<[1], [0], [0], [1], [0, 0, 1, 1], [], []>} : vector<2x16xf32>, vector<16x8xf32>, vector<2x8xf32> -> vector<2x8xf32>
      %cst_30 = arith.constant 0.000000e+00 : f32
      %23 = vector.broadcast %cst_30 : f32 to vector<2x8xf32>
      %24 = arith.maximumf %22, %23 : vector<2x8xf32>
      %cst_31 = arith.constant dense<0.000000e+00> : vector<2x16xf32>
      %25 = tpu.matmul %24, %21, %cst_31 {dimension_numbers = #tpu.dot_dimension_numbers<[1], [0], [0], [1], [0, 0, 1, 1], [], []>} : vector<2x8xf32>, vector<8x16xf32>, vector<2x16xf32> -> vector<2x16xf32>
      %26 = vector.extract_strided_slice %25 {offsets = [0, 0], sizes = [1, 16], strides = [1, 1]} : vector<2x16xf32> to vector<1x16xf32>
      %27 = vector.extract_strided_slice %25 {offsets = [1, 0], sizes = [1, 16], strides = [1, 1]} : vector<2x16xf32> to vector<1x16xf32>
      %28 = arith.addf %26, %27 : vector<1x16xf32>
      %29 = arith.negf %28 : vector<1x16xf32>
      %30 = math.exp %29 : vector<1x16xf32>
      %cst_32 = arith.constant 1.000000e+00 : f32
      %31 = vector.broadcast %cst_32 : f32 to vector<1x16xf32>
      %32 = arith.addf %31, %30 : vector<1x16xf32>
      %33 = arith.divf %31, %32 : vector<1x16xf32>
      %34 = vector.shape_cast %33 : vector<1x16xf32> to vector<1x1x16xf32>
      %c0_33 = arith.constant 0 : index
      %c0_34 = arith.constant 0 : index
      %c0_35 = arith.constant 0 : index
      %35 = vector.load %arg5[%c0_33, %c0_34, %c0_35] : memref<1x1x16xf32, #tpu.memory_space<vmem>>, vector<1x1x16xf32>
      tpu.vector_store %arg5[%c0_33, %c0_34, %c0_35], %34 {strides = array<i32>} : memref<1x1x16xf32, #tpu.memory_space<vmem>>, vector<1x1x16xf32>,
    } else {
    }
    return
  }
  func.func @transform_0(%arg0: i32, %arg1: i32) -> (i32, i32, i32) {
    %c0_i32 = arith.constant 0 : i32
    %c0_i32_0 = arith.constant 0 : i32
    return %arg0, %c0_i32, %arg1 : i32, i32, i32
  }
  func.func @transform_1(%arg0: i32, %arg1: i32) -> (i32, i32) {
    %c0_i32 = arith.constant 0 : i32
    %c0_i32_0 = arith.constant 0 : i32
    %c0_i32_1 = arith.constant 0 : i32
    return %c0_i32, %c0_i32_0 : i32, i32
  }
  func.func @transform_2(%arg0: i32, %arg1: i32) -> (i32, i32) {
    %c0_i32 = arith.constant 0 : i32
    %c0_i32_0 = arith.constant 0 : i32
    %c0_i32_1 = arith.constant 0 : i32
    return %c0_i32, %c0_i32_0 : i32, i32
  }
  func.func @transform_3(%arg0: i32, %arg1: i32) -> (i32, i32, i32) {
    %c0_i32 = arith.constant 0 : i32
    %c0_i32_0 = arith.constant 0 : i32
    %c0_i32_1 = arith.constant 0 : i32
    return %arg0, %c0_i32, %c0_i32_0 : i32, i32, i32
  }
}

</mosaic_0001>

<bundles_post_ra>
// kernel: tpu_custom_call.1
= control target key start
LH: loop header
LB: loop body
LE: loop exit
PB: predicated region body
PF: predicated region fallthrough
CT: control target
= control target key end

     0   :  { %8 = vsyncpa [#allocation5], 0  ;;  %s938_s0 = inlined_call_operand.hbm [shape: f32[2,16,256], index: 0, kind: input, shape index: {}]   ;;  %s939_s1 = inlined_call_operand.vmem [shape: f32[16,8], index: 1, kind: input, shape index: {}]   ;;  %s940_s2 = inlined_call_operand.vmem [shape: f32[8,16], index: 2, kind: input, shape index: {}]   ;;  %s941_s3 = inlined_call_operand.hbm [shape: f32[2,1,16], index: 3, kind: output, shape index: {}]  }
   0x1   :  { %10 = vsyncpa [#allocation5 + $0x1], 0 }
   0x2   :  { %11 = vsyncpa [#allocation6], 0 }
   0x3   :  { %13 = vsyncpa [#allocation6 + $0x1], 0  ;;  %s790_s12 = smov 0   ;;  %s792_s13 = smov 0  }
   0x4   :  { %s794_s14 = smov 0   ;;  %s796_s15 = smov 0  }
   0x5   :  { %s798_s16 = smov 0   ;;  %s800_s17 = smov 0  }
   0x6 LB: > { %s551_s18 = sadd.s32 4294967295, %s762_s17   ;;  %s552_s19 = sadd.s32 4294967294, %s762_s17   ;;  %s762_s17 = sphi %s800_s17, %s19_s17   ;;  %s758_s16 = sphi %s798_s16, %s952_s16   ;;  %s754_s15 = sphi %s796_s15, %s951_s15   ;;  %s750_s14 = sphi %s794_s14, %s950_s14   ;;  %s746_s13 = sphi %s792_s13, %s949_s13   ;;  %s742_s12 = sphi %s790_s12, %s948_s12  }
   0x7   : > { %s31_s20 = sadd.s32 1, %s758_s16  ;;  %s40_s21 = sadd.s32 1, %s750_s14 }
   0x8   : > { %p33_p0 = scmp.ge.s32.totalorder %s31_s20, 2  ;;  %p47_p1 = scmp.ne.s32.totalorder %s750_s14, %s746_s13 }
   0x9   : > { %p48_p2 = scmp.eq.s32.totalorder %s762_s17, 0  ;;  %p53_p3 = scmp.ne.s32.totalorder %s746_s13, %s742_s12 }
   0xa   : > { %s954_s20 = smov (%p33_p0, %s31_s20), 0  ;;  %p54_p5 = scmp.eq.s32.totalorder %s551_s18, 0 }
   0xb   : > { %p831_p4 = por %p48_p2, %p47_p1  ;;  %s35_s23 = ssub.s32 %s758_s16, %s954_s20 }
   0xc   : > { %p119_p6 = scmp.eq.s32.totalorder %s551_s18, 1  ;;  %p38_p7 = scmp.eq.s32.totalorder %s35_s23, 0 }
   0xd   : > { %p837_p8 = por %p54_p5, %p53_p3  ;;  %p125_p10 = scmp.eq.s32.totalorder %s552_s19, 1 }
   0xe   : > { %p841_p9 = por %p119_p6, %p47_p1  ;;  %p596_p13 = scmp.lt.s32.totalorder %s762_s17, 2 }
   0xf   : > { %s846_s26 = scalar_select %p38_p7, %s750_s14, %s40_s21  }
  0x10   : > { %p848_p11 = por %p125_p10, %p53_p3  ;;  %s151_s28 = sand.u32 1, %s750_s14  }
  0x11   : > { %s555_s29 = sshll.u32 %s151_s28, 5  ;;  %s566_s30 = sshll.u32 %s758_s16, 9 }
  0x12   : > { %s163_s6 = scalar_lea.hbm %s938_s0, %s566_s30  ;;  %s155_s7 = scalar_lea.vmem [#allocation4], %s555_s29 }
  0x13   : > { %s164_s8 = sshll.u32 %s155_s7, 4  ;;  %p861_p0 = pnand %p596_p13, %p831_p4  ;;  %s165_s8 = int_to_ptr.vmem [resolvable:$true] %s164_s8 }
  0x14   : > { %p558_p1 = scmp.ge.s32.totalorder %s762_s17, 1  ;;  %s152_s10 = scalar_lea.sflag [#allocation5], %s151_s28 }
  0x15   : > { %p656_p2 = pneg %p861_p0  ;;  %s667_s11 = scalar_lea.vmem %s165_s8, 512 }
  0x16   : > { %p668_p3 = scmp.ne.s32.totalorder %s165_s8, %s667_s11  ;;  %s764_s18 = smov [#allocation4]  }
  0x17   : > { %s672_s19 = sshll.u32 %s764_s18, 4  ;;  %s673_s19 = int_to_ptr.vmem [resolvable:$false] %s672_s19 }
  0x18   : > { %p670_p5 = pnand %p668_p3, %p656_p2  ;;  %s674_s21 = scalar_lea.vmem %s673_s19, 1024 }
  0x19   : > { %p675_p7 = scmp.lt.s32.totalorder %s165_s8, %s673_s19  ;;  %p676_p10 = scmp.lt.s32.totalorder %s674_s21, %s667_s11 }
  0x1a   : > { %p671_p6 = pneg %p670_p5 }
  0x1b   : > { %p677_p12 = por %p676_p10, %p675_p7 }
  0x1d   : > { %p678_p4 = pnand %p677_p12, %p671_p6 }
  0x1f   : > { %681 = shalt.err (!%p678_p4)
}
  0x20   : > { %s765_s22 = smov 256   ;;  %s766_s23 = smov 16  }
  0x21   : > { %591 = dma.hbm_to_vmem [thread:$0]  (!%p861_p0), %s163_s6, 512, %s165_s8, %s152_s10, %s765_s22, %s765_s22, %s766_s23  }
  0x22   : > { %p172_p13 = scmp.lt.s32.totalorder %s762_s17, 3 }
  0x24   : > { %p173_p2 = pnand %p558_p1, %p172_p13 }
  0x25   : > { %s874_s28 = sand.u32 (!%p173_p2), 1, %s746_s13  }
  0x26   : > { %176 = sbr.rel (%p173_p2) target bundleno = 632 (0x278), region = 32  ;;  %s559_s29 = sshll.u32 (!%p173_p2), %s874_s28, 5 }
  0x27   : > { %s179_s30 = scalar_lea.sflag (!%p173_p2), [#allocation5], %s874_s28  ;;  %s182_s4 = scalar_lea.vmem (!%p173_p2), [#allocation4], %s559_s29 }
  0x2b   : > { %733 = dma.done.wait (%p837_p8), %s179_s30, 512  }
  0x2c   : > { %735 = vsyncadd (%p837_p8), %s179_s30, 4294966784  ;;  %v217_v0 = vld [vmem:[%s182_s4] sm:$0xff]  ;;  %v218_v1 = vld [vmem:[%s182_s4 + $0x8] sm:$0xff]  ;;  %v767_v8 = vmov 0.0   ;;  %vm768_vm0 = vmmov 0   ;;  %v269_v11 = vlaneseq  ;;  %vm280_vm1 = vcmask 130112  }
  0x2d   : > { %v219_v2 = vld [vmem:[%s182_s4 + $0x10] sm:$0xff]  ;;  %v259_v3 = vadd.f32 %v218_v1, %v217_v0  ;;  %v249_v4 = vmax.f32 %v217_v0, %v218_v1  ;;  %v220_v5 = vld [vmem:[%s182_s4 + $0x18] sm:$0xff]  ;;  %572 = vmatprep.subr.mxu0 %v767_v8  ;;  %v298_v9 = vld [vmem:[%s939_s1 + $0x8] sm:$0xff]  ;;  %579 = vmatprep.subr.mxu1 %v767_v8  ;;  %vm295_vm2 = vcmask 1040384   ;;  %vm300_vm3 = vcmask 130048   ;;  %s563_s10 = sshll.u32 %s754_s15, 4 }
  0x2e   : > { %v262_v6 = vadd.f32 %v220_v5, %v219_v2  ;;  %v252_v7 = vmax.f32 %v219_v2, %v220_v5  ;;  %v297_v10 = vld [vmem:[%s939_s1] sm:$0xff]  ;;  %573 = vmatpush3.msra.mxu0 %v298_v9  ;;  %576 = vmatprep.mubr.msk.f32.mxu0 %vm768_vm0, %v767_v8  ;;  %v270_v12 = vand.u32 127, %v269_v11  ;;  %v272_v14 = vshrl.u32 %v269_v11, 7  ;;  %s203_s11 = scalar_lea.vmem [#allocation7], %s874_s28  ;;  %s896_s22 = scalar_lea.hbm %s941_s3, %s563_s10 }
  0x2f   : > { %260 = vadd.xlane.f32.xlu0 %v259_v3  ;;  %250 = vmax.xlane.f32.xlu1 %v249_v4  ;;  %v299_v30 = vld [vmem:[%s940_s2] sm:$0xff]  ;;  %vm375_vm4 = vcmask 64512   ;;  %s474_s18 = sshll.u32 %s203_s11, 4  ;;  %vm459_vm5 = vcmask 122880   ;;  %s462_s23 = scalar_lea.sflag [#allocation6], %s874_s28  ;;  %s475_s18 = int_to_ptr.vmem [resolvable:$true] %s474_s18 }
  0x30   : > { %574 = vmatprep.subr.mxu0 %v767_v8  ;;  %581 = vmatprep.mubr.msk.f32.mxu1 %vm768_vm0, %v767_v8  ;;  %v275_v13 = vadd.s32 4294967288, %v270_v12  ;;  %v273_v18 = vsub.s32 %v270_v12, %v272_v14  ;;  %s682_s29 = scalar_lea.vmem %s475_s18, 16  ;;  %s769_s30 = smov [#allocation7]  }
  0x31   : > { %575 = vmatpush3.msra.mxu0 %v297_v10  ;;  %580 = vmatpush3.msra.mxu1 %v299_v30  ;;  %p683_p8 = scmp.ne.s32.totalorder %s475_s18, %s682_s29  ;;  %s686_s4 = sshll.u32 %s769_s30, 4  ;;  %s687_s4 = int_to_ptr.vmem [resolvable:$false] %s686_s4 }
  0x32   : > { %v278_v17 = vsub.s32 %v275_v13, %v272_v14  ;;  %s688_s15 = scalar_lea.vmem %s687_s4, 32  ;;  %p689_p1 = scmp.lt.s32.totalorder %s475_s18, %s687_s4 }
  0x33   : > { %263 = vadd.xlane.f32.xlu0 %v262_v6  ;;  %253 = vmax.xlane.f32.xlu1 %v252_v7  ;;  %p684_p12 = pnand %p683_p8, %p841_p9  ;;  %p690_p3 = scmp.lt.s32.totalorder %s688_s15, %s682_s29 }
  0x35   : > { %p685_p0 = pneg %p684_p12  ;;  %p691_p5 = por %p690_p3, %p689_p1 }
  0x37   : > { %p692_p6 = pnand %p691_p5, %p685_p0 }
  0xb8   : > { %v261_v15 = vpop.xlane.xlu0 %260  ;;  %v251_v16 = vpop.xlane.xlu1 %250 }
  0xb9   : > { %v265_v19 = vmul.f32 0.00390625, %v261_v15  ;;  %v274_v25 = vrot.slane %v251_v16, %v273_v18 }
  0xbb   : > { %v288_v24 = vrot.slane %v265_v19, %v273_v18 }
  0xbc   : > { %v264_v20 = vpop.xlane.xlu0 %263  ;;  %v254_v21 = vpop.xlane.xlu1 %253 }
  0xbd   : > { %v266_v22 = vmul.f32 0.00390625, %v264_v20  ;;  %v279_v23 = vrot.slane %v254_v21, %v278_v17 }
  0xbf   : > { %v292_v26 = vrot.slane %v266_v22, %v278_v17  ;;  %v281_v27 = vsel %vm280_vm1, %v279_v23, %v274_v25 }
  0xc1   : > { %v293_v28 = vsel %vm280_vm1, %v292_v26, %v288_v24 }
  0xc2   : > { %v296_v29 = vsel %vm295_vm2, %v281_v27, %v293_v28 }
  0xc3   : > { %577 = vmatmul.mubr.msk.f32.vlgmr.msra.gmra.mxu0 %vm300_vm3, %v296_v29 }
 0x183   : > { %v370_v31 = vpop.f32.mrf.mxu0 }
 0x184   : > { %v374_v32 = vmax.f32 %v370_v31, 0.0 }
 0x185   : > { %v578_v33 = vpop.f32.mrf.mxu0 }
 0x186   : > { %582 = vmatmul.mubr.msk.f32.vlgmr.msra.gmra.mxu1 %vm375_vm4, %v374_v32 }
 0x246   : > { %v445_v34 = vpop.f32.mrf.mxu1 }
 0x247   : > { %v450_v35 = vrot.slane %v445_v34, 1 }
 0x248   : > { %v583_v36 = vpop.f32.mrf.mxu1 }
 0x249   : > { %v452_v37 = vadd.f32 %v450_v35, %v445_v34 }
 0x24b   : > { %v562_v38 = vmul.f32 -1.442695, %v452_v37 }
 0x24d   : > { %650 = vpow2.f32 %v562_v38 }
 0x25a   : > { %v651_v39 = vpop.eup %650 }
 0x25b   : > { %v456_v40 = vadd.f32 1.0, %v651_v39 }
 0x25d   : > { %652 = vrcp.f32 %v456_v40 }
 0x26a   : > { %v653_v41 = vpop.eup %652 }
 0x26b   : > { %460 = vst.msk [vmem:[%s203_s11] sm:$0x1] %vm459_vm5, %v653_v41 }
 0x26c   : > { %695 = shalt.err (!%p692_p6)
}
 0x26d   : > { %s696_s5 = scalar_lea.hbm %s896_s22, 16  ;;  %s700_s24 = scalar_lea.hbm %s941_s3, 32 }
 0x26e   : > { %p697_p7 = scmp.ne.s32.totalorder %s896_s22, %s696_s5  ;;  %p701_p13 = scmp.lt.s32.totalorder %s896_s22, %s941_s3 }
 0x26f   : > { %p702_p2 = scmp.lt.s32.totalorder %s700_s24, %s696_s5 }
 0x270   : > { %p698_p10 = pnand %p697_p7, %p841_p9 }
 0x271   : > { %p703_p8 = por %p702_p2, %p701_p13 }
 0x272   : > { %p699_p4 = pneg %p698_p10 }
 0x274   : > { %p704_p12 = pnand %p703_p8, %p699_p4 }
 0x276   : > { %707 = shalt.err (!%p704_p12)
}
 0x277   : > { %586 = dma.vmem_to_hbm [thread:$0]  (%p841_p9), %s475_s18, 16, %s896_s22, %s462_s23  }
 0x278 PF: > { %s486_s9 = sand.u32 1, %s742_s12   ;;  %p947_p0 = scmp.ge.s32.totalorder %s762_s17, 2 }
 0x279   : > { %s487_s10 = scalar_lea.sflag [#allocation6], %s486_s9 }
 0x27a   : > { %p593_p1 = pnand %p947_p0, %p848_p11 }
 0x27c   : > { %p594_p3 = pneg %p593_p1 }
 0x27e   : > { %737 = dma.done.wait (%p594_p3), %s487_s10, 16  }
 0x27f   : > { %739 = vsyncadd (%p594_p3), %s487_s10, 4294967280  ;;  %s19_s17 = sadd.s32 1, %s762_s17   ;;  %s948_s12 = smov %s746_s13 }
 0x280   : > { %p16_p5 = scmp.ge.s32.totalorder %s19_s17, 4   ;;  %s949_s13 = smov %s750_s14 }
 0x281   : > { %s950_s14 = smov %s846_s26  ;;  %s951_s15 = smov %s758_s16 }
 0x282   : > { %s952_s16 = smov %s954_s20  ;;  %18 = sbr.rel (!%p16_p5) target bundleno = 6 (0x6), region = 81 }
 0x287   :  { %491 = vsyncpa [#allocation5], 1 }
 0x288   :  { %493 = vsyncpa [#allocation5 + $0x1], 1 }
 0x289   :  { %494 = vsyncpa [#allocation6], 1 }
 0x28a   :  { %496 = vsyncpa [#allocation6 + $0x1], 1 }

// kernel: tpu_custom_call.1
= control target key start
LH: loop header
LB: loop body
LE: loop exit
PB: predicated region body
PF: predicated region fallthrough
CT: control target
= control target key end

     0   :  { %8 = vsyncpa [#allocation5], 0  ;;  %s938_s0 = inlined_call_operand.hbm [shape: f32[2,16,256], index: 0, kind: input, shape index: {}]   ;;  %s939_s1 = inlined_call_operand.vmem [shape: f32[16,8], index: 1, kind: input, shape index: {}]   ;;  %s940_s2 = inlined_call_operand.vmem [shape: f32[8,16], index: 2, kind: input, shape index: {}]   ;;  %s941_s3 = inlined_call_operand.hbm [shape: f32[2,1,16], index: 3, kind: output, shape index: {}]  }
   0x1   :  { %10 = vsyncpa [#allocation5 + $0x1], 0 }
   0x2   :  { %11 = vsyncpa [#allocation6], 0 }
   0x3   :  { %13 = vsyncpa [#allocation6 + $0x1], 0  ;;  %s790_s12 = smov 0   ;;  %s792_s13 = smov 0  }
   0x4   :  { %s794_s14 = smov 0   ;;  %s796_s15 = smov 0  }
   0x5   :  { %s798_s16 = smov 0   ;;  %s800_s17 = smov 0  }
   0x6 LB: > { %s551_s18 = sadd.s32 4294967295, %s762_s17   ;;  %s552_s19 = sadd.s32 4294967294, %s762_s17   ;;  %s762_s17 = sphi %s800_s17, %s19_s17   ;;  %s758_s16 = sphi %s798_s16, %s952_s16   ;;  %s754_s15 = sphi %s796_s15, %s951_s15   ;;  %s750_s14 = sphi %s794_s14, %s950_s14   ;;  %s746_s13 = sphi %s792_s13, %s949_s13   ;;  %s742_s12 = sphi %s790_s12, %s948_s12  }
   0x7   : > { %s31_s20 = sadd.s32 1, %s758_s16  ;;  %s40_s21 = sadd.s32 1, %s750_s14 }
   0x8   : > { %p33_p0 = scmp.ge.s32.totalorder %s31_s20, 2  ;;  %p47_p1 = scmp.ne.s32.totalorder %s750_s14, %s746_s13 }
   0x9   : > { %p48_p2 = scmp.eq.s32.totalorder %s762_s17, 0  ;;  %p53_p3 = scmp.ne.s32.totalorder %s746_s13, %s742_s12 }
   0xa   : > { %s954_s20 = smov (%p33_p0, %s31_s20), 0  ;;  %p54_p5 = scmp.eq.s32.totalorder %s551_s18, 0 }
   0xb   : > { %p831_p4 = por %p48_p2, %p47_p1  ;;  %s35_s23 = ssub.s32 %s758_s16, %s954_s20 }
   0xc   : > { %p119_p6 = scmp.eq.s32.totalorder %s551_s18, 1  ;;  %p38_p7 = scmp.eq.s32.totalorder %s35_s23, 0 }
   0xd   : > { %p837_p8 = por %p54_p5, %p53_p3  ;;  %p125_p10 = scmp.eq.s32.totalorder %s552_s19, 1 }
   0xe   : > { %p841_p9 = por %p119_p6, %p47_p1  ;;  %p596_p13 = scmp.lt.s32.totalorder %s762_s17, 2 }
   0xf   : > { %s846_s26 = scalar_select %p38_p7, %s750_s14, %s40_s21  }
  0x10   : > { %p848_p11 = por %p125_p10, %p53_p3  ;;  %s151_s28 = sand.u32 1, %s750_s14  }
  0x11   : > { %s555_s29 = sshll.u32 %s151_s28, 5  ;;  %s566_s30 = sshll.u32 %s758_s16, 9 }
  0x12   : > { %s163_s6 = scalar_lea.hbm %s938_s0, %s566_s30  ;;  %s155_s7 = scalar_lea.vmem [#allocation4], %s555_s29 }
  0x13   : > { %s164_s8 = sshll.u32 %s155_s7, 4  ;;  %p861_p0 = pnand %p596_p13, %p831_p4  ;;  %s165_s8 = int_to_ptr.vmem [resolvable:$true] %s164_s8 }
  0x14   : > { %p558_p1 = scmp.ge.s32.totalorder %s762_s17, 1  ;;  %s152_s10 = scalar_lea.sflag [#allocation5], %s151_s28 }
  0x15   : > { %p656_p2 = pneg %p861_p0  ;;  %s667_s11 = scalar_lea.vmem %s165_s8, 512 }
  0x16   : > { %p668_p3 = scmp.ne.s32.totalorder %s165_s8, %s667_s11  ;;  %s764_s18 = smov [#allocation4]  }
  0x17   : > { %s672_s19 = sshll.u32 %s764_s18, 4  ;;  %s673_s19 = int_to_ptr.vmem [resolvable:$false] %s672_s19 }
  0x18   : > { %p670_p5 = pnand %p668_p3, %p656_p2  ;;  %s674_s21 = scalar_lea.vmem %s673_s19, 1024 }
  0x19   : > { %p675_p7 = scmp.lt.s32.totalorder %s165_s8, %s673_s19  ;;  %p676_p10 = scmp.lt.s32.totalorder %s674_s21, %s667_s11 }
  0x1a   : > { %p671_p6 = pneg %p670_p5 }
  0x1b   : > { %p677_p12 = por %p676_p10, %p675_p7 }
  0x1d   : > { %p678_p4 = pnand %p677_p12, %p671_p6 }
  0x1f   : > { %681 = shalt.err (!%p678_p4)
}
  0x20   : > { %s765_s22 = smov 256   ;;  %s766_s23 = smov 16  }
  0x21   : > { %591 = dma.hbm_to_vmem [thread:$0]  (!%p861_p0), %s163_s6, 512, %s165_s8, %s152_s10, %s765_s22, %s765_s22, %s766_s23  }
  0x22   : > { %p172_p13 = scmp.lt.s32.totalorder %s762_s17, 3 }
  0x24   : > { %p173_p2 = pnand %p558_p1, %p172_p13 }
  0x25   : > { %s874_s28 = sand.u32 (!%p173_p2), 1, %s746_s13  }
  0x26   : > { %176 = sbr.rel (%p173_p2) target bundleno = 632 (0x278), region = 32  ;;  %s559_s29 = sshll.u32 (!%p173_p2), %s874_s28, 5 }
  0x27   : > { %s179_s30 = scalar_lea.sflag (!%p173_p2), [#allocation5], %s874_s28  ;;  %s182_s4 = scalar_lea.vmem (!%p173_p2), [#allocation4], %s559_s29 }
  0x2b   : > { %733 = dma.done.wait (%p837_p8), %s179_s30, 512  }
  0x2c   : > { %735 = vsyncadd (%p837_p8), %s179_s30, 4294966784  ;;  %v217_v0 = vld [vmem:[%s182_s4] sm:$0xff]  ;;  %v218_v1 = vld [vmem:[%s182_s4 + $0x8] sm:$0xff]  ;;  %v767_v8 = vmov 0.0   ;;  %vm768_vm0 = vmmov 0   ;;  %v269_v11 = vlaneseq  ;;  %vm280_vm1 = vcmask 130112  }
  0x2d   : > { %v219_v2 = vld [vmem:[%s182_s4 + $0x10] sm:$0xff]  ;;  %v259_v3 = vadd.f32 %v218_v1, %v217_v0  ;;  %v249_v4 = vmax.f32 %v217_v0, %v218_v1  ;;  %v220_v5 = vld [vmem:[%s182_s4 + $0x18] sm:$0xff]  ;;  %572 = vmatprep.subr.mxu0 %v767_v8  ;;  %v298_v9 = vld [vmem:[%s939_s1 + $0x8] sm:$0xff]  ;;  %579 = vmatprep.subr.mxu1 %v767_v8  ;;  %vm295_vm2 = vcmask 1040384   ;;  %vm300_vm3 = vcmask 130048   ;;  %s563_s10 = sshll.u32 %s754_s15, 4 }
  0x2e   : > { %v262_v6 = vadd.f32 %v220_v5, %v219_v2  ;;  %v252_v7 = vmax.f32 %v219_v2, %v220_v5  ;;  %v297_v10 = vld [vmem:[%s939_s1] sm:$0xff]  ;;  %573 = vmatpush3.msra.mxu0 %v298_v9  ;;  %576 = vmatprep.mubr.msk.f32.mxu0 %vm768_vm0, %v767_v8  ;;  %v270_v12 = vand.u32 127, %v269_v11  ;;  %v272_v14 = vshrl.u32 %v269_v11, 7  ;;  %s203_s11 = scalar_lea.vmem [#allocation7], %s874_s28  ;;  %s896_s22 = scalar_lea.hbm %s941_s3, %s563_s10 }
  0x2f   : > { %260 = vadd.xlane.f32.xlu0 %v259_v3  ;;  %250 = vmax.xlane.f32.xlu1 %v249_v4  ;;  %v299_v30 = vld [vmem:[%s940_s2] sm:$0xff]  ;;  %vm375_vm4 = vcmask 64512   ;;  %s474_s18 = sshll.u32 %s203_s11, 4  ;;  %vm459_vm5 = vcmask 122880   ;;  %s462_s23 = scalar_lea.sflag [#allocation6], %s874_s28  ;;  %s475_s18 = int_to_ptr.vmem [resolvable:$true] %s474_s18 }
  0x30   : > { %574 = vmatprep.subr.mxu0 %v767_v8  ;;  %581 = vmatprep.mubr.msk.f32.mxu1 %vm768_vm0, %v767_v8  ;;  %v275_v13 = vadd.s32 4294967288, %v270_v12  ;;  %v273_v18 = vsub.s32 %v270_v12, %v272_v14  ;;  %s682_s29 = scalar_lea.vmem %s475_s18, 16  ;;  %s769_s30 = smov [#allocation7]  }
  0x31   : > { %575 = vmatpush3.msra.mxu0 %v297_v10  ;;  %580 = vmatpush3.msra.mxu1 %v299_v30  ;;  %p683_p8 = scmp.ne.s32.totalorder %s475_s18, %s682_s29  ;;  %s686_s4 = sshll.u32 %s769_s30, 4  ;;  %s687_s4 = int_to_ptr.vmem [resolvable:$false] %s686_s4 }
  0x32   : > { %v278_v17 = vsub.s32 %v275_v13, %v272_v14  ;;  %s688_s15 = scalar_lea.vmem %s687_s4, 32  ;;  %p689_p1 = scmp.lt.s32.totalorder %s475_s18, %s687_s4 }
  0x33   : > { %263 = vadd.xlane.f32.xlu0 %v262_v6  ;;  %253 = vmax.xlane.f32.xlu1 %v252_v7  ;;  %p684_p12 = pnand %p683_p8, %p841_p9  ;;  %p690_p3 = scmp.lt.s32.totalorder %s688_s15, %s682_s29 }
  0x35   : > { %p685_p0 = pneg %p684_p12  ;;  %p691_p5 = por %p690_p3, %p689_p1 }
  0x37   : > { %p692_p6 = pnand %p691_p5, %p685_p0 }
  0xb8   : > { %v261_v15 = vpop.xlane.xlu0 %260  ;;  %v251_v16 = vpop.xlane.xlu1 %250 }
  0xb9   : > { %v265_v19 = vmul.f32 0.00390625, %v261_v15  ;;  %v274_v25 = vrot.slane %v251_v16, %v273_v18 }
  0xbb   : > { %v288_v24 = vrot.slane %v265_v19, %v273_v18 }
  0xbc   : > { %v264_v20 = vpop.xlane.xlu0 %263  ;;  %v254_v21 = vpop.xlane.xlu1 %253 }
  0xbd   : > { %v266_v22 = vmul.f32 0.00390625, %v264_v20  ;;  %v279_v23 = vrot.slane %v254_v21, %v278_v17 }
  0xbf   : > { %v292_v26 = vrot.slane %v266_v22, %v278_v17  ;;  %v281_v27 = vsel %vm280_vm1, %v279_v23, %v274_v25 }
  0xc1   : > { %v293_v28 = vsel %vm280_vm1, %v292_v26, %v288_v24 }
  0xc2   : > { %v296_v29 = vsel %vm295_vm2, %v281_v27, %v293_v28 }
  0xc3   : > { %577 = vmatmul.mubr.msk.f32.vlgmr.msra.gmra.mxu0 %vm300_vm3, %v296_v29 }
 0x183   : > { %v370_v31 = vpop.f32.mrf.mxu0 }
 0x184   : > { %v374_v32 = vmax.f32 %v370_v31, 0.0 }
 0x185   : > { %v578_v33 = vpop.f32.mrf.mxu0 }
 0x186   : > { %582 = vmatmul.mubr.msk.f32.vlgmr.msra.gmra.mxu1 %vm375_vm4, %v374_v32 }
 0x246   : > { %v445_v34 = vpop.f32.mrf.mxu1 }
 0x247   : > { %v450_v35 = vrot.slane %v445_v34, 1 }
 0x248   : > { %v583_v36 = vpop.f32.mrf.mxu1 }
 0x249   : > { %v452_v37 = vadd.f32 %v450_v35, %v445_v34 }
 0x24b   : > { %v562_v38 = vmul.f32 -1.442695, %v452_v37 }
 0x24d   : > { %650 = vpow2.f32 %v562_v38 }
 0x25a   : > { %v651_v39 = vpop.eup %650 }
 0x25b   : > { %v456_v40 = vadd.f32 1.0, %v651_v39 }
 0x25d   : > { %652 = vrcp.f32 %v456_v40 }
 0x26a   : > { %v653_v41 = vpop.eup %652 }
 0x26b   : > { %460 = vst.msk [vmem:[%s203_s11] sm:$0x1] %vm459_vm5, %v653_v41 }
 0x26c   : > { %695 = shalt.err (!%p692_p6)
}
 0x26d   : > { %s696_s5 = scalar_lea.hbm %s896_s22, 16  ;;  %s700_s24 = scalar_lea.hbm %s941_s3, 32 }
 0x26e   : > { %p697_p7 = scmp.ne.s32.totalorder %s896_s22, %s696_s5  ;;  %p701_p13 = scmp.lt.s32.totalorder %s896_s22, %s941_s3 }
 0x26f   : > { %p702_p2 = scmp.lt.s32.totalorder %s700_s24, %s696_s5 }
 0x270   : > { %p698_p10 = pnand %p697_p7, %p841_p9 }
 0x271   : > { %p703_p8 = por %p702_p2, %p701_p13 }
 0x272   : > { %p699_p4 = pneg %p698_p10 }
 0x274   : > { %p704_p12 = pnand %p703_p8, %p699_p4 }
 0x276   : > { %707 = shalt.err (!%p704_p12)
}
 0x277   : > { %586 = dma.vmem_to_hbm [thread:$0]  (%p841_p9), %s475_s18, 16, %s896_s22, %s462_s23  }
 0x278 PF: > { %s486_s9 = sand.u32 1, %s742_s12   ;;  %p947_p0 = scmp.ge.s32.totalorder %s762_s17, 2 }
 0x279   : > { %s487_s10 = scalar_lea.sflag [#allocation6], %s486_s9 }
 0x27a   : > { %p593_p1 = pnand %p947_p0, %p848_p11 }
 0x27c   : > { %p594_p3 = pneg %p593_p1 }
 0x27e   : > { %737 = dma.done.wait (%p594_p3), %s487_s10, 16  }
 0x27f   : > { %739 = vsyncadd (%p594_p3), %s487_s10, 4294967280  ;;  %s19_s17 = sadd.s32 1, %s762_s17   ;;  %s948_s12 = smov %s746_s13 }
 0x280   : > { %p16_p5 = scmp.ge.s32.totalorder %s19_s17, 4   ;;  %s949_s13 = smov %s750_s14 }
 0x281   : > { %s950_s14 = smov %s846_s26  ;;  %s951_s15 = smov %s758_s16 }
 0x282   : > { %s952_s16 = smov %s954_s20  ;;  %18 = sbr.rel (!%p16_p5) target bundleno = 6 (0x6), region = 81 }
 0x287   :  { %491 = vsyncpa [#allocation5], 1 }
 0x288   :  { %493 = vsyncpa [#allocation5 + $0x1], 1 }
 0x289   :  { %494 = vsyncpa [#allocation6], 1 }
 0x28a   :  { %496 = vsyncpa [#allocation6 + $0x1], 1 }

</bundles_post_ra>
